<compile_context>
chip_gen: v6e
topology: v6e:2x2x1
jax: 0.10.0
libtpu: 0.0.40
codegen_flags: <defaults>
</compile_context>

<pallas_src>
import functools

import jax
import jax.numpy as jnp
from jax import lax
from jax.experimental import pallas as pl
from jax.experimental.pallas import tpu as pltpu


VMEM_LIMIT_BYTES = 32 * 1024 * 1024  # safe on v5e/v6e/v7x


def _round_up(x, m):
    return ((x + m - 1) // m) * m


def _tile(dim, preferred):
    """Largest candidate in `preferred` that evenly divides `dim`, else `dim`."""
    for p in preferred:
        if dim % p == 0:
            return p
    return dim


# ---------------------------------------------------------------------------
# Kernel 1: fused QKV projection  (B*S, Hp) @ (Hp, 3*Hp) + bias
# ---------------------------------------------------------------------------
def _qkv_proj_kernel(x_ref, w_ref, b_ref, o_ref, acc_ref):
    k = pl.program_id(2)

    @pl.when(k == 0)
    def _():
        acc_ref[...] = jnp.zeros_like(acc_ref)

    acc_ref[...] += jnp.dot(x_ref[...], w_ref[...],
                            preferred_element_type=jnp.float32)

    @pl.when(k == pl.num_programs(2) - 1)
    def _():
        o_ref[...] = (acc_ref[...] + b_ref[...].astype(jnp.float32)).astype(o_ref.dtype)


def _qkv_projection(x2d, w_all, b_all, *, out_dtype):
    M, Hp = x2d.shape
    N = w_all.shape[1]  # 3 * Hp

    tm = _tile(M, (256, 128))
    tn = _tile(N, (512, 384, 256, 128))
    tk = _tile(Hp, (512, 256, 128))

    return pl.pallas_call(
        _qkv_proj_kernel,
        out_shape=jax.ShapeDtypeStruct((M, N), out_dtype),
        grid_spec=pltpu.PrefetchScalarGridSpec(
            num_scalar_prefetch=0,
            grid=(M // tm, N // tn, Hp // tk),
            in_specs=[
                pl.BlockSpec((tm, tk), lambda i, j, k: (i, k)),   # x
                pl.BlockSpec((tk, tn), lambda i, j, k: (k, j)),   # W (packed q|k|v)
                pl.BlockSpec((1, tn), lambda i, j, k: (0, j)),    # bias
            ],
            out_specs=pl.BlockSpec((tm, tn), lambda i, j, k: (i, j)),
            scratch_shapes=[pltpu.VMEM((tm, tn), jnp.float32)],
        ),
        compiler_params=pltpu.CompilerParams(
            dimension_semantics=("parallel", "parallel", "arbitrary"),
            vmem_limit_bytes=VMEM_LIMIT_BYTES,
        ),
    )(x2d, w_all, b_all)


# ---------------------------------------------------------------------------
# Kernel 2: flash-style attention (online softmax over KV blocks)
# The packed (B, S, 3Hp) QKV tensor is passed three times; the index maps pick
# block 0 / 1 / 2 along the last axis for Q / K / V -> no HBM slice copies.
# ---------------------------------------------------------------------------
def _flash_attn_kernel(q_ref, k_ref, v_ref, o_ref, m_ref, l_ref, acc_ref):
    kv = pl.program_id(2)

    @pl.when(kv == 0)
    def _():
        m_ref[...] = jnp.full_like(m_ref, -jnp.inf)
        l_ref[...] = jnp.zeros_like(l_ref)
        acc_ref[...] = jnp.zeros_like(acc_ref)

    q = q_ref[0]  # (TQ, Hp)  bf16
    k = k_ref[0]  # (TK, Hp)  bf16
    v = v_ref[0]  # (TK, Hp)  bf16

    # scores: contract the last dim of both operands -> no explicit k.T transpose.
    s = lax.dot_general(q, k, (((1,), (1,)), ((), ())),
                        preferred_element_type=jnp.float32)       # (TQ, TK) f32

    m_prev = m_ref[...]
    m_new = jnp.maximum(m_prev, jnp.max(s, axis=-1, keepdims=True))
    alpha = jnp.exp(m_prev - m_new)
    p = jnp.exp(s - m_new)                                        # f32 softmax math

    l_ref[...] = alpha * l_ref[...] + jnp.sum(p, axis=-1, keepdims=True)
    acc_ref[...] = alpha * acc_ref[...] + jnp.dot(
        p.astype(v.dtype), v, preferred_element_type=jnp.float32)
    m_ref[...] = m_new

    @pl.when(kv == pl.num_programs(2) - 1)
    def _():
        inv_l = pl.reciprocal(l_ref[...], approx=True)            # EUP slot, ~free
        o_ref[0] = (acc_ref[...] * inv_l).astype(o_ref.dtype)


def _flash_attention(qkv3, B, S, Hp, *, out_dtype):
    tq = _tile(S, (256, 128))
    tk = _tile(S, (256, 128))

    return pl.pallas_call(
        _flash_attn_kernel,
        out_shape=jax.ShapeDtypeStruct((B, S, Hp), out_dtype),
        grid_spec=pltpu.PrefetchScalarGridSpec(
            num_scalar_prefetch=0,
            grid=(B, S // tq, S // tk),
            in_specs=[
                pl.BlockSpec((1, tq, Hp), lambda b, qi, ki: (b, qi, 0)),  # Q columns
                pl.BlockSpec((1, tk, Hp), lambda b, qi, ki: (b, ki, 1)),  # K columns
                pl.BlockSpec((1, tk, Hp), lambda b, qi, ki: (b, ki, 2)),  # V columns
            ],
            out_specs=pl.BlockSpec((1, tq, Hp), lambda b, qi, ki: (b, qi, 0)),
            scratch_shapes=[
                pltpu.VMEM((tq, 1), jnp.float32),    # running max m
                pltpu.VMEM((tq, 1), jnp.float32),    # running sum l
                pltpu.VMEM((tq, Hp), jnp.float32),   # output accumulator
            ],
        ),
        compiler_params=pltpu.CompilerParams(
            # B and Q-block axes parallel (megacore); KV reduction axis last.
            dimension_semantics=("parallel", "parallel", "arbitrary"),
            vmem_limit_bytes=VMEM_LIMIT_BYTES,
        ),
    )(qkv3, qkv3, qkv3)


# ---------------------------------------------------------------------------
# Wrapper: PyTorch-layout params -> padded bf16 operands -> kernels
# ---------------------------------------------------------------------------
@functools.partial(jax.jit, static_argnames=("compute_dtype",))
def self_attention(x, wq, bq, wk, bk, wv, bv, *, compute_dtype=jnp.bfloat16):
    """x: (B, S, H); w*: (H, H) PyTorch-style (out, in); b*: (H,)."""
    B, S, H = x.shape
    Hp = _round_up(H, 128)  # lane-dense padding (zero weight/bias cols => same math)

    def prep_w(w):  # (out, in) -> (in, out), pad to (Hp, Hp)
        wt = w.T.astype(compute_dtype)
        return jnp.pad(wt, ((0, Hp - H), (0, Hp - H)))

    def prep_b(b):
        return jnp.pad(b.astype(compute_dtype), (0, Hp - H))

    w_all = jnp.concatenate([prep_w(wq), prep_w(wk), prep_w(wv)], axis=1)      # (Hp, 3Hp)
    b_all = jnp.concatenate([prep_b(bq), prep_b(bk), prep_b(bv)]).reshape(1, 3 * Hp)

    x2d = jnp.pad(x.astype(compute_dtype),
                  ((0, 0), (0, 0), (0, Hp - H))).reshape(B * S, Hp)

    qkv = _qkv_projection(x2d, w_all, b_all, out_dtype=compute_dtype)          # (B*S, 3Hp)
    qkv3 = qkv.reshape(B, S, 3 * Hp)                                           # free reshape

    out = _flash_attention(qkv3, B, S, Hp, out_dtype=x.dtype)                  # (B, S, Hp)
    return out[..., :H]


# ---------------------------------------------------------------------------
# Reference (pure JAX, f32) and test
# ---------------------------------------------------------------------------
def _reference(x, wq, bq, wk, bk, wv, bv):
    q = jnp.einsum("bsh,oh->bso", x, wq) + bq
    k = jnp.einsum("bsh,oh->bso", x, wk) + bk
    v = jnp.einsum("bsh,oh->bso", x, wv) + bv
    scores = jnp.einsum("bqh,bkh->bqk", q, k)
    attn = jax.nn.softmax(scores, axis=2)
    return jnp.einsum("bqk,bkh->bqh", attn, v)


if __name__ == "__main__":
    B, S, H = 2, 8, 32
    key = jax.random.PRNGKey(0)
    kx, k1, k2, k3, k4, k5, k6 = jax.random.split(key, 7)

    x = jax.random.normal(kx, (B, S, H), dtype=jnp.float32)

    # deterministic nn.Linear-style init: U(-1/sqrt(H), 1/sqrt(H))
    bound = 1.0 / (H ** 0.5)
    wq = jax.random.uniform(k1, (H, H), jnp.float32, -bound, bound)
    bq = jax.random.uniform(k2, (H,), jnp.float32, -bound, bound)
    wk = jax.random.uniform(k3, (H, H), jnp.float32, -bound, bound)
    bk = jax.random.uniform(k4, (H,), jnp.float32, -bound, bound)
    wv = jax.random.uniform(k5, (H, H), jnp.float32, -bound, bound)
    bv = jax.random.uniform(k6, (H,), jnp.float32, -bound, bound)

    out = self_attention(x, wq, bq, wk, bk, wv, bv)
    out = jax.block_until_ready(out)

    ref = _reference(x, wq, bq, wk, bk, wv, bv)
    assert out.shape == (B, S, H)
    # bf16 MXU operands => slightly looser tolerance vs the f32 reference
    max_diff = float(jnp.max(jnp.abs(out - ref)))
    assert jnp.allclose(out, ref, atol=5e-2, rtol=5e-2), f"max diff {max_diff}"

    print("KERNEL_OK")
</pallas_src>

<mosaic_0001>
module attributes {stable_mosaic.version = 11 : i64} {
  func.func @_qkv_proj_kernel(%arg0: i32, %arg1: i32, %arg2: i32, %arg3: memref<16x128xbf16, #tpu.memory_space<vmem>>, %arg4: memref<128x384xbf16, #tpu.memory_space<vmem>>, %arg5: memref<1x384xbf16, #tpu.memory_space<vmem>>, %arg6: memref<16x384xbf16, #tpu.memory_space<vmem>>, %arg7: memref<16x384xf32, #tpu.memory_space<vmem>>) attributes {dimension_semantics = [#tpu.dimension_semantics<parallel>, #tpu.dimension_semantics<parallel>, #tpu.dimension_semantics<arbitrary>], iteration_bounds = array<i64: 1, 1, 1>, scalar_prefetch = 0 : i64, scratch_operands = 1 : i64, tpu.core_type = #tpu.core_type<tc>, window_params = [{transform_indices = @transform_0, window_bounds = array<i64: 16, 128>}, {transform_indices = @transform_1, window_bounds = array<i64: 128, 384>}, {transform_indices = @transform_2, window_bounds = array<i64: 1, 384>}, {transform_indices = @transform_3, window_bounds = array<i64: 16, 384>}]} {
    %c0_i32 = arith.constant 0 : i32
    %0 = arith.cmpi eq, %arg2, %c0_i32 : i32
    %1 = arith.extui %0 : i1 to i32
    %c0_i32_0 = arith.constant 0 : i32
    %2 = arith.cmpi ne, %1, %c0_i32_0 : i32
    scf.if %2 {
      %cst_10 = arith.constant 0.000000e+00 : f32
      %12 = vector.broadcast %cst_10 : f32 to vector<16x384xf32>
      %c0_11 = arith.constant 0 : index
      %c0_12 = arith.constant 0 : index
      %13 = vector.load %arg7[%c0_11, %c0_12] : memref<16x384xf32, #tpu.memory_space<vmem>>, vector<16x384xf32>
      tpu.vector_store %arg7[%c0_11, %c0_12], %12 {strides = array<i32>} : memref<16x384xf32, #tpu.memory_space<vmem>>, vector<16x384xf32>,
    } else {
    }
    %c0 = arith.constant 0 : index
    %c0_1 = arith.constant 0 : index
    %3 = vector.load %arg7[%c0, %c0_1] : memref<16x384xf32, #tpu.memory_space<vmem>>, vector<16x384xf32>
    %c0_2 = arith.constant 0 : index
    %c0_3 = arith.constant 0 : index
    %4 = vector.load %arg3[%c0_2, %c0_3] : memref<16x128xbf16, #tpu.memory_space<vmem>>, vector<16x128xbf16>
    %c0_4 = arith.constant 0 : index
    %c0_5 = arith.constant 0 : index
    %5 = vector.load %arg4[%c0_4, %c0_5] : memref<128x384xbf16, #tpu.memory_space<vmem>>, vector<128x384xbf16>
    %cst = arith.constant dense<0.000000e+00> : vector<16x384xf32>
    %6 = tpu.matmul %4, %5, %cst {dimension_numbers = #tpu.dot_dimension_numbers<[1], [0], [0], [1], [0, 0, 1, 1], [], []>} : vector<16x128xbf16>, vector<128x384xbf16>, vector<16x384xf32> -> vector<16x384xf32>
    %7 = arith.addf %3, %6 : vector<16x384xf32>
    %c0_6 = arith.constant 0 : index
    %c0_7 = arith.constant 0 : index
    %8 = vector.load %arg7[%c0_6, %c0_7] : memref<16x384xf32, #tpu.memory_space<vmem>>, vector<16x384xf32>
    tpu.vector_store %arg7[%c0_6, %c0_7], %7 {strides = array<i32>} : memref<16x384xf32, #tpu.memory_space<vmem>>, vector<16x384xf32>,
    %c0_i32_8 = arith.constant 0 : i32
    %9 = arith.cmpi eq, %arg2, %c0_i32_8 : i32
    %10 = arith.extui %9 : i1 to i32
    %c0_i32_9 = arith.constant 0 : i32
    %11 = arith.cmpi ne, %10, %c0_i32_9 : i32
    scf.if %11 {
      %c0_10 = arith.constant 0 : index
      %c0_11 = arith.constant 0 : index
      %12 = vector.load %arg7[%c0_10, %c0_11] : memref<16x384xf32, #tpu.memory_space<vmem>>, vector<16x384xf32>
      %c0_12 = arith.constant 0 : index
      %c0_13 = arith.constant 0 : index
      %13 = vector.load %arg5[%c0_12, %c0_13] : memref<1x384xbf16, #tpu.memory_space<vmem>>, vector<1x384xbf16>
      %14 = arith.extf %13 : vector<1x384xbf16> to vector<1x384xf32>
      %15 = vector.broadcast %14 : vector<1x384xf32> to vector<16x384xf32>
      %16 = arith.addf %12, %15 : vector<16x384xf32>
      %17 = arith.truncf %16 : vector<16x384xf32> to vector<16x384xbf16>
      %c0_14 = arith.constant 0 : index
      %c0_15 = arith.constant 0 : index
      %18 = vector.load %arg6[%c0_14, %c0_15] : memref<16x384xbf16, #tpu.memory_space<vmem>>, vector<16x384xbf16>
      tpu.vector_store %arg6[%c0_14, %c0_15], %17 {strides = array<i32>} : memref<16x384xbf16, #tpu.memory_space<vmem>>, vector<16x384xbf16>,
    } else {
    }
    return
  }
  func.func @transform_0(%arg0: i32, %arg1: i32, %arg2: i32) -> (i32, i32) {
    %c0_i32 = arith.constant 0 : i32
    return %arg0, %arg2 : i32, i32
  }
  func.func @transform_1(%arg0: i32, %arg1: i32, %arg2: i32) -> (i32, i32) {
    %c0_i32 = arith.constant 0 : i32
    return %arg2, %arg1 : i32, i32
  }
  func.func @transform_2(%arg0: i32, %arg1: i32, %arg2: i32) -> (i32, i32) {
    %c0_i32 = arith.constant 0 : i32
    %c0_i32_0 = arith.constant 0 : i32
    return %c0_i32, %arg1 : i32, i32
  }
  func.func @transform_3(%arg0: i32, %arg1: i32, %arg2: i32) -> (i32, i32) {
    %c0_i32 = arith.constant 0 : i32
    return %arg0, %arg1 : i32, i32
  }
}

module attributes {stable_mosaic.version = 11 : i64} {
  func.func @_flash_attn_kernel(%arg0: i32, %arg1: i32, %arg2: i32, %arg3: memref<1x8x128xbf16, #tpu.memory_space<vmem>>, %arg4: memref<1x8x128xbf16, #tpu.memory_space<vmem>>, %arg5: memref<1x8x128xbf16, #tpu.memory_space<vmem>>, %arg6: memref<1x8x128xf32, #tpu.memory_space<vmem>>, %arg7: memref<8x1xf32, #tpu.memory_space<vmem>>, %arg8: memref<8x1xf32, #tpu.memory_space<vmem>>, %arg9: memref<8x128xf32, #tpu.memory_space<vmem>>) attributes {dimension_semantics = [#tpu.dimension_semantics<parallel>, #tpu.dimension_semantics<parallel>, #tpu.dimension_semantics<arbitrary>], iteration_bounds = array<i64: 2, 1, 1>, scalar_prefetch = 0 : i64, scratch_operands = 3 : i64, tpu.core_type = #tpu.core_type<tc>, window_params = [{transform_indices = @transform_0, window_bounds = array<i64: 1, 8, 128>}, {transform_indices = @transform_1, window_bounds = array<i64: 1, 8, 128>}, {transform_indices = @transform_2, window_bounds = array<i64: 1, 8, 128>}, {transform_indices = @transform_3, window_bounds = array<i64: 1, 8, 128>}]} {
    %c0_i32 = arith.constant 0 : i32
    %0 = arith.cmpi eq, %arg2, %c0_i32 : i32
    %1 = arith.extui %0 : i1 to i32
    %c0_i32_0 = arith.constant 0 : i32
    %2 = arith.cmpi ne, %1, %c0_i32_0 : i32
    scf.if %2 {
      %cst_26 = arith.constant 0xFF800000 : f32
      %36 = vector.broadcast %cst_26 : f32 to vector<8x1xf32>
      %c0_27 = arith.constant 0 : index
      %c0_28 = arith.constant 0 : index
      %37 = vector.load %arg7[%c0_27, %c0_28] : memref<8x1xf32, #tpu.memory_space<vmem>>, vector<8x1xf32>
      tpu.vector_store %arg7[%c0_27, %c0_28], %36 {strides = array<i32>} : memref<8x1xf32, #tpu.memory_space<vmem>>, vector<8x1xf32>,
      %cst_29 = arith.constant 0.000000e+00 : f32
      %38 = vector.broadcast %cst_29 : f32 to vector<8x1xf32>
      %c0_30 = arith.constant 0 : index
      %c0_31 = arith.constant 0 : index
      %39 = vector.load %arg8[%c0_30, %c0_31] : memref<8x1xf32, #tpu.memory_space<vmem>>, vector<8x1xf32>
      tpu.vector_store %arg8[%c0_30, %c0_31], %38 {strides = array<i32>} : memref<8x1xf32, #tpu.memory_space<vmem>>, vector<8x1xf32>,
      %cst_32 = arith.constant 0.000000e+00 : f32
      %40 = vector.broadcast %cst_32 : f32 to vector<8x128xf32>
      %c0_33 = arith.constant 0 : index
      %c0_34 = arith.constant 0 : index
      %41 = vector.load %arg9[%c0_33, %c0_34] : memref<8x128xf32, #tpu.memory_space<vmem>>, vector<8x128xf32>
      tpu.vector_store %arg9[%c0_33, %c0_34], %40 {strides = array<i32>} : memref<8x128xf32, #tpu.memory_space<vmem>>, vector<8x128xf32>,
    } else {
    }
    %c0 = arith.constant 0 : index
    %c0_1 = arith.constant 0 : index
    %c0_2 = arith.constant 0 : index
    %3 = vector.load %arg3[%c0, %c0_1, %c0_2] : memref<1x8x128xbf16, #tpu.memory_space<vmem>>, vector<1x8x128xbf16>
    %4 = vector.shape_cast %3 : vector<1x8x128xbf16> to vector<8x128xbf16>
    %c0_3 = arith.constant 0 : index
    %c0_4 = arith.constant 0 : index
    %c0_5 = arith.constant 0 : index
    %5 = vector.load %arg4[%c0_3, %c0_4, %c0_5] : memref<1x8x128xbf16, #tpu.memory_space<vmem>>, vector<1x8x128xbf16>
    %6 = vector.shape_cast %5 : vector<1x8x128xbf16> to vector<8x128xbf16>
    %c0_6 = arith.constant 0 : index
    %c0_7 = arith.constant 0 : index
    %c0_8 = arith.constant 0 : index
    %7 = vector.load %arg5[%c0_6, %c0_7, %c0_8] : memref<1x8x128xbf16, #tpu.memory_space<vmem>>, vector<1x8x128xbf16>
    %8 = vector.shape_cast %7 : vector<1x8x128xbf16> to vector<8x128xbf16>
    %cst = arith.constant dense<0.000000e+00> : vector<8x8xf32>
    %9 = tpu.matmul %4, %6, %cst {dimension_numbers = #tpu.dot_dimension_numbers<[1], [1], [0], [0], [0, 0, 1, 0], [], []>} : vector<8x128xbf16>, vector<8x128xbf16>, vector<8x8xf32> -> vector<8x8xf32>
    %c0_9 = arith.constant 0 : index
    %c0_10 = arith.constant 0 : index
    %10 = vector.load %arg7[%c0_9, %c0_10] : memref<8x1xf32, #tpu.memory_space<vmem>>, vector<8x1xf32>
    %cst_11 = arith.constant dense<0xFF800000> : vector<8xf32>
    %11 = vector.multi_reduction <maximumf>, %9, %cst_11 [1] : vector<8x8xf32> to vector<8xf32>
    %12 = vector.shape_cast %11 : vector<8xf32> to vector<8x1xf32>
    %13 = arith.maximumf %10, %12 : vector<8x1xf32>
    %14 = arith.subf %10, %13 : vector<8x1xf32>
    %15 = math.exp %14 : vector<8x1xf32>
    %16 = vector.broadcast %13 : vector<8x1xf32> to vector<8x8xf32>
    %17 = arith.subf %9, %16 : vector<8x8xf32>
    %18 = math.exp %17 : vector<8x8xf32>
    %c0_12 = arith.constant 0 : index
    %c0_13 = arith.constant 0 : index
    %19 = vector.load %arg8[%c0_12, %c0_13] : memref<8x1xf32, #tpu.memory_space<vmem>>, vector<8x1xf32>
    %20 = arith.mulf %15, %19 : vector<8x1xf32>
    %cst_14 = arith.constant dense<0.000000e+00> : vector<8xf32>
    %21 = vector.multi_reduction <add>, %18, %cst_14 [1] : vector<8x8xf32> to vector<8xf32>
    %22 = vector.shape_cast %21 : vector<8xf32> to vector<8x1xf32>
    %23 = arith.addf %20, %22 : vector<8x1xf32>
    %c0_15 = arith.constant 0 : index
    %c0_16 = arith.constant 0 : index
    %24 = vector.load %arg8[%c0_15, %c0_16] : memref<8x1xf32, #tpu.memory_space<vmem>>, vector<8x1xf32>
    tpu.vector_store %arg8[%c0_15, %c0_16], %23 {strides = array<i32>} : memref<8x1xf32, #tpu.memory_space<vmem>>, vector<8x1xf32>,
    %c0_17 = arith.constant 0 : index
    %c0_18 = arith.constant 0 : index
    %25 = vector.load %arg9[%c0_17, %c0_18] : memref<8x128xf32, #tpu.memory_space<vmem>>, vector<8x128xf32>
    %26 = vector.broadcast %15 : vector<8x1xf32> to vector<8x128xf32>
    %27 = arith.mulf %26, %25 : vector<8x128xf32>
    %28 = arith.truncf %18 : vector<8x8xf32> to vector<8x8xbf16>
    %cst_19 = arith.constant dense<0.000000e+00> : vector<8x128xf32>
    %29 = tpu.matmul %28, %8, %cst_19 {dimension_numbers = #tpu.dot_dimension_numbers<[1], [0], [0], [1], [0, 0, 1, 1], [], []>} : vector<8x8xbf16>, vector<8x128xbf16>, vector<8x128xf32> -> vector<8x128xf32>
    %30 = arith.addf %27, %29 : vector<8x128xf32>
    %c0_20 = arith.constant 0 : index
    %c0_21 = arith.constant 0 : index
    %31 = vector.load %arg9[%c0_20, %c0_21] : memref<8x128xf32, #tpu.memory_space<vmem>>, vector<8x128xf32>
    tpu.vector_store %arg9[%c0_20, %c0_21], %30 {strides = array<i32>} : memref<8x128xf32, #tpu.memory_space<vmem>>, vector<8x128xf32>,
    %c0_22 = arith.constant 0 : index
    %c0_23 = arith.constant 0 : index
    %32 = vector.load %arg7[%c0_22, %c0_23] : memref<8x1xf32, #tpu.memory_space<vmem>>, vector<8x1xf32>
    tpu.vector_store %arg7[%c0_22, %c0_23], %13 {strides = array<i32>} : memref<8x1xf32, #tpu.memory_space<vmem>>, vector<8x1xf32>,
    %c0_i32_24 = arith.constant 0 : i32
    %33 = arith.cmpi eq, %arg2, %c0_i32_24 : i32
    %34 = arith.extui %33 : i1 to i32
    %c0_i32_25 = arith.constant 0 : i32
    %35 = arith.cmpi ne, %34, %c0_i32_25 : i32
    scf.if %35 {
      %c0_26 = arith.constant 0 : index
      %c0_27 = arith.constant 0 : index
      %36 = vector.load %arg8[%c0_26, %c0_27] : memref<8x1xf32, #tpu.memory_space<vmem>>, vector<8x1xf32>
      %37 = tpu.reciprocal %36 {approx = true} : vector<8x1xf32> -> vector<8x1xf32>
      %c0_28 = arith.constant 0 : index
      %c0_29 = arith.constant 0 : index
      %38 = vector.load %arg9[%c0_28, %c0_29] : memref<8x128xf32, #tpu.memory_space<vmem>>, vector<8x128xf32>
      %39 = vector.broadcast %37 : vector<8x1xf32> to vector<8x128xf32>
      %40 = arith.mulf %38, %39 : vector<8x128xf32>
      %c0_30 = arith.constant 0 : index
      %c0_31 = arith.constant 0 : index
      %c0_32 = arith.constant 0 : index
      %41 = vector.load %arg6[%c0_30, %c0_31, %c0_32] : memref<1x8x128xf32, #tpu.memory_space<vmem>>, vector<1x8x128xf32>
      %42 = vector.shape_cast %41 : vector<1x8x128xf32> to vector<8x128xf32>
      %43 = vector.shape_cast %40 : vector<8x128xf32> to vector<1x8x128xf32>
      tpu.vector_store %arg6[%c0_30, %c0_31, %c0_32], %43 {strides = array<i32>} : memref<1x8x128xf32, #tpu.memory_space<vmem>>, vector<1x8x128xf32>,
    } else {
    }
    return
  }
  func.func @transform_0(%arg0: i32, %arg1: i32, %arg2: i32) -> (i32, i32, i32) {
    %c0_i32 = arith.constant 0 : i32
    %c0_i32_0 = arith.constant 0 : i32
    return %arg0, %arg1, %c0_i32 : i32, i32, i32
  }
  func.func @transform_1(%arg0: i32, %arg1: i32, %arg2: i32) -> (i32, i32, i32) {
    %c1_i32 = arith.constant 1 : i32
    %c0_i32 = arith.constant 0 : i32
    return %arg0, %arg2, %c1_i32 : i32, i32, i32
  }
  func.func @transform_2(%arg0: i32, %arg1: i32, %arg2: i32) -> (i32, i32, i32) {
    %c2_i32 = arith.constant 2 : i32
    %c0_i32 = arith.constant 0 : i32
    return %arg0, %arg2, %c2_i32 : i32, i32, i32
  }
  func.func @transform_3(%arg0: i32, %arg1: i32, %arg2: i32) -> (i32, i32, i32) {
    %c0_i32 = arith.constant 0 : i32
    %c0_i32_0 = arith.constant 0 : i32
    return %arg0, %arg1, %c0_i32 : i32, i32, i32
  }
}

</mosaic_0001>

<bundles_post_ra>
// kernel: self_attention.2
= control target key start
LH: loop header
LB: loop body
LE: loop exit
PB: predicated region body
PF: predicated region fallthrough
CT: control target
= control target key end

     0   :  { %v466_v0 = vmov 0.0   ;;  %vm467_vm0 = vmmov 0   ;;  %v468_v3 = vmov 0   ;;  %v307_v27 = vlaneseq  ;;  %s579_s1 = inlined_call_operand.vmem [shape: bf16[128,384], index: 1, kind: input, shape index: {}]   ;;  %s580_s0 = inlined_call_operand.vmem [shape: bf16[16,128], index: 0, kind: input, shape index: {}]   ;;  %s581_s2 = inlined_call_operand.vmem [shape: bf16[1,384], index: 2, kind: input, shape index: {}]   ;;  %s582_s3 = inlined_call_operand.vmem [shape: bf16[16,384], index: 3, kind: output, shape index: {}]  }
   0x1   :  { %410 = vmatprep.subr.bf16.mxu1 %v466_v0  ;;  %v433_v1 = vld [vmem:[%s579_s1 + $0xac] ss:$12 sps:$4 sm:$0xff]   ;;  %426 = vmatprep.mubr.msk.bf16.mxu1 %vm467_vm0, %v466_v0  ;;  %v435_v2 = vld [vmem:[%s579_s1 + $0xb0] ss:$12 sps:$4 sm:$0xff]   ;;  %v436_v4 = vld [vmem:[%s579_s1 + $0xa8] ss:$12 sps:$4 sm:$0xff]  }
   0x2   :  { %231 = vmatprep.mubr.bf16.mxu0 %v468_v3  ;;  %199 = vmatprep.subr.bf16.mxu0 %v433_v1  ;;  %v437_v5 = vld [vmem:[%s579_s1 + $0x94] ss:$12 sps:$4 sm:$0xff]   ;;  %v439_v6 = vld [vmem:[%s579_s1 + $0x98] ss:$12 sps:$4 sm:$0xff]   ;;  %v440_v7 = vld [vmem:[%s579_s1 + $0x90] ss:$12 sps:$4 sm:$0xff]  }
   0x3   :  { %411 = vmatpush3.bf16.msra.mxu1 %v435_v2  ;;  %200 = vmatpush1.bf16.msra.mxu0 %v436_v4  ;;  %v441_v8 = vld [vmem:[%s579_s1 + $0x7c] ss:$12 sps:$4 sm:$0xff]   ;;  %v443_v9 = vld [vmem:[%s579_s1 + $0x80] ss:$12 sps:$4 sm:$0xff]   ;;  %v444_v10 = vld [vmem:[%s579_s1 + $0x78] ss:$12 sps:$4 sm:$0xff]  }
   0x4   :  { %412 = vmatprep.subr.bf16.mxu1 %v466_v0  ;;  %201 = vmatprep.subr.bf16.mxu0 %v437_v5  ;;  %v445_v11 = vld [vmem:[%s579_s1 + $0x64] ss:$12 sps:$4 sm:$0xff]   ;;  %v447_v12 = vld [vmem:[%s579_s1 + $0x68] ss:$12 sps:$4 sm:$0xff]   ;;  %v448_v13 = vld [vmem:[%s579_s1 + $0x60] ss:$12 sps:$4 sm:$0xff]  }
   0x5   :  { %v449_v14 = vld [vmem:[%s579_s1 + $0x4c] ss:$12 sps:$4 sm:$0xff]   ;;  %v451_v15 = vld [vmem:[%s579_s1 + $0x50] ss:$12 sps:$4 sm:$0xff]   ;;  %v452_v16 = vld [vmem:[%s579_s1 + $0x48] ss:$12 sps:$4 sm:$0xff]  }
   0x6   :  { %v453_v17 = vld [vmem:[%s579_s1 + $0x34] ss:$12 sps:$4 sm:$0xff]   ;;  %v455_v18 = vld [vmem:[%s579_s1 + $0x38] ss:$12 sps:$4 sm:$0xff]   ;;  %v456_v19 = vld [vmem:[%s579_s1 + $0x30] ss:$12 sps:$4 sm:$0xff]  }
   0x7   :  { %413 = vmatpush3.bf16.msra.mxu1 %v439_v6  ;;  %202 = vmatpush1.bf16.msra.mxu0 %v440_v7  ;;  %v457_v20 = vld [vmem:[%s579_s1 + $0x1c] ss:$12 sps:$4 sm:$0xff]   ;;  %v459_v21 = vld [vmem:[%s579_s1 + $0x20] ss:$12 sps:$4 sm:$0xff]   ;;  %v460_v22 = vld [vmem:[%s579_s1 + $0x18] ss:$12 sps:$4 sm:$0xff]  }
   0x8   :  { %414 = vmatprep.subr.bf16.mxu1 %v466_v0  ;;  %203 = vmatprep.subr.bf16.mxu0 %v441_v8  ;;  %v461_v23 = vld [vmem:[%s579_s1 + $0x4] ss:$12 sps:$4 sm:$0xff]   ;;  %v463_v24 = vld [vmem:[%s579_s1 + $0x8] ss:$12 sps:$4 sm:$0xff]   ;;  %v464_v25 = vld [vmem:[%s579_s1] ss:$12 sps:$4 sm:$0xff]  }
   0x9   :  { %v465_v26 = vld [vmem:[%s580_s0] sm:$0xff]   ;;  %v308_v28 = vshrl.u32 %v307_v27, 7 }
   0xa   :  { %v304_v29 = vld [vmem:[%s581_s2] sm:$0x7] }
   0xb   :  { %415 = vmatpush3.bf16.msra.mxu1 %v443_v9  ;;  %204 = vmatpush1.bf16.msra.mxu0 %v444_v10  ;;  %v317_v30 = vsub.s32 4, %v308_v28  ;;  %v305_v31 = vunpack.c.l.bf16 %v304_v29  ;;  %v309_v32 = vsub.s32 0, %v308_v28  ;;  %v313_v33 = vsub.s32 2, %v308_v28 }
   0xc   :  { %416 = vmatprep.subr.bf16.mxu1 %v466_v0  ;;  %205 = vmatprep.subr.bf16.mxu0 %v445_v11 }
   0xd   :  { %v318_v34 = vrot.slane %v305_v31, %v317_v30  ;;  %v310_v35 = vrot.slane %v305_v31, %v309_v32  ;;  %v314_v36 = vrot.slane %v305_v31, %v313_v33 }
   0xf   :  { %417 = vmatpush3.bf16.msra.mxu1 %v447_v12  ;;  %206 = vmatpush1.bf16.msra.mxu0 %v448_v13  ;;  %v333_v37 = vrot.slane %v318_v34, %v309_v32  ;;  %v325_v39 = vrot.slane %v310_v35, %v309_v32  ;;  %v329_v40 = vrot.slane %v314_v36, %v309_v32 }
  0x10   :  { %418 = vmatprep.subr.bf16.mxu1 %v466_v0  ;;  %207 = vmatprep.subr.bf16.mxu0 %v449_v14 }
  0x13   :  { %419 = vmatpush3.bf16.msra.mxu1 %v451_v15  ;;  %208 = vmatpush1.bf16.msra.mxu0 %v452_v16 }
  0x14   :  { %420 = vmatprep.subr.bf16.mxu1 %v466_v0  ;;  %209 = vmatprep.subr.bf16.mxu0 %v453_v17 }
  0x17   :  { %421 = vmatpush3.bf16.msra.mxu1 %v455_v18  ;;  %210 = vmatpush1.bf16.msra.mxu0 %v456_v19 }
  0x18   :  { %422 = vmatprep.subr.bf16.mxu1 %v466_v0  ;;  %211 = vmatprep.subr.bf16.mxu0 %v457_v20 }
  0x1b   :  { %423 = vmatpush3.bf16.msra.mxu1 %v459_v21  ;;  %212 = vmatpush1.bf16.msra.mxu0 %v460_v22 }
  0x1c   :  { %424 = vmatprep.subr.bf16.mxu1 %v466_v0  ;;  %213 = vmatprep.subr.bf16.mxu0 %v461_v23 }
  0x1f   :  { %425 = vmatpush3.bf16.msra.mxu1 %v463_v24  ;;  %214 = vmatpush1.bf16.msra.mxu0 %v464_v25 }
  0x22   :  { %427 = vmatmul.mubr.bf16.vlgmr.msra.gmra.mxu1 %v465_v26  ;;  %232 = vmatmul.mubr.bf16.vlgmr.msra.gmra.mxu0 %v465_v26 }
  0xe2   :  { %v276_v38 = vpop.f32.mrf.mxu1  ;;  %v233_v42 = vpop.f32.mrf.mxu0 }
  0xe3   :  { %v336_v41 = vadd.f32 %v333_v37, %v276_v38  ;;  %v334_v46 = vadd.f32 %v325_v39, %v233_v42 }
  0xe4   :  { %v428_v43 = vpop.f32.mrf.mxu1  ;;  %v235_v45 = vpop.f32.mrf.mxu0 }
  0xe5   :  { %v398_v44 = vpack.c.bf16 %v336_v41, %v336_v41  ;;  %v335_v47 = vadd.f32 %v329_v40, %v235_v45 }
  0xe6   :  { %v279_v48 = vpop.f32.mrf.mxu1  ;;  %v237_v50 = vpop.f32.mrf.mxu0 }
  0xe7   :  { %361 = vst [vmem:[%s582_s3 + $0x8] sm:$0xf] %v398_v44  ;;  %v339_v49 = vadd.f32 %v333_v37, %v279_v48  ;;  %v397_v51 = vpack.c.bf16 %v335_v47, %v334_v46  ;;  %v337_v55 = vadd.f32 %v325_v39, %v237_v50 }
  0xe8   :  { %v429_v52 = vpop.f32.mrf.mxu1  ;;  %v239_v54 = vpop.f32.mrf.mxu0 }
  0xe9   :  { %v400_v53 = vpack.c.bf16 %v339_v49, %v339_v49  ;;  %360 = vst [vmem:[%s582_s3] sm:$0xff] %v397_v51  ;;  %v338_v56 = vadd.f32 %v329_v40, %v239_v54 }
  0xeb   :  { %363 = vst [vmem:[%s582_s3 + $0x14] sm:$0xf] %v400_v53  ;;  %v399_v57 = vpack.c.bf16 %v338_v56, %v337_v55 }
  0xed   :  { %362 = vst [vmem:[%s582_s3 + $0xc] sm:$0xff] %v399_v57 }

// kernel: self_attention.3
= control target key start
LH: loop header
LB: loop body
LE: loop exit
PB: predicated region body
PF: predicated region fallthrough
CT: control target
= control target key end

     0   :  { %8 = vsyncpa [#allocation6], 0  ;;  %s889_s0 = inlined_call_operand.vmem [shape: bf16[2,8,384], index: 0, kind: input, shape index: {}, may-alias: {0,1,2}]   ;;  %s890_s1 = inlined_call_operand.vmem [shape: bf16[2,8,384], index: 1, kind: input, shape index: {}, may-alias: {0,1,2}]   ;;  %s891_s2 = inlined_call_operand.vmem [shape: bf16[2,8,384], index: 2, kind: input, shape index: {}, may-alias: {0,1,2}]   ;;  %s892_s3 = inlined_call_operand.hbm [shape: f32[2,8,128], index: 3, kind: output, shape index: {}]  }
   0x1   :  { %10 = vsyncpa [#allocation6 + $0x1], 0  ;;  %s772_s12 = smov 0   ;;  %s774_s13 = smov 0  }
   0x2   :  { %s776_s14 = smov 0   ;;  %s778_s15 = smov 0  }
   0x3   :  { %s780_s16 = smov 0   ;;  %s782_s17 = smov 0  }
   0x4 LB: > { %s569_s18 = sadd.s32 4294967295, %s745_s17   ;;  %s570_s19 = sadd.s32 4294967294, %s745_s17   ;;  %s745_s17 = sphi %s782_s17, %s16_s17   ;;  %s741_s16 = sphi %s780_s16, %s899_s16   ;;  %s737_s15 = sphi %s778_s15, %s898_s15   ;;  %s733_s14 = sphi %s776_s14, %s897_s14   ;;  %s729_s13 = sphi %s774_s13, %s896_s13   ;;  %s725_s12 = sphi %s772_s12, %s895_s12  }
   0x5   : > { %s35_s20 = sadd.s32 1, %s741_s16  ;;  %s128_s21 = sadd.s32 1, %s733_s14 }
   0x6   : > { %p37_p0 = scmp.ge.s32.totalorder %s35_s20, 2  ;;  %p138_p1 = scmp.ne.s32.totalorder %s733_s14, %s729_s13 }
   0x7   : > { %p139_p2 = scmp.eq.s32.totalorder %s569_s18, 1  ;;  %p144_p3 = scmp.ne.s32.totalorder %s729_s13, %s725_s12 }
   0x8   : > { %s901_s20 = smov (%p37_p0, %s35_s20), 0  ;;  %p145_p5 = scmp.eq.s32.totalorder %s570_s19, 1 }
   0x9   : > { %p812_p4 = por %p139_p2, %p138_p1  ;;  %s123_s23 = ssub.s32 %s741_s16, %s901_s20 }
   0xa   : > { %p573_p6 = scmp.ge.s32.totalorder %s745_s17, 1  ;;  %p126_p7 = scmp.eq.s32.totalorder %s123_s23, 0 }
   0xb   : > { %p819_p8 = por %p145_p5, %p144_p3  ;;  %p201_p9 = scmp.lt.s32.totalorder %s745_s17, 3 }
   0xc   : > { %s825_s25 = scalar_select %p126_p7, %s733_s14, %s128_s21  }
   0xd   : > { %p202_p10 = pnand %p573_p6, %p201_p9 }
   0xe   : > { %p249_p11 = scmp.lt.s32.totalorder (!%p202_p10), %s737_s15, 1  ;;  %s246_s10 = sand.u32 (!%p202_p10), 1, %s729_s13  }
   0xf   : > { %205 = sbr.rel (%p202_p10) target bundleno = 811 (0x32b), region = 32  ;;  %s574_s11 = sshll.u32 (!%p202_p10), %s246_s10, 3 }
  0x10   : > { %s582_s18 = sshll.u32 (!%p202_p10), %s737_s15, 7  ;;  %s248_s19 = scalar_lea.vmem (!%p202_p10), [#allocation5], %s574_s11 }
  0x11   : > { %s441_s21 = sshll.u32 (!%p202_p10), %s248_s19, 4  ;;  %s427_s28 = scalar_lea.sflag (!%p202_p10), [#allocation6], %s246_s10  ;;  %s442_s21 = int_to_ptr.vmem [resolvable:$true] %s441_s21 }
  0x12   : > { %s669_s29 = scalar_lea.vmem (!%p202_p10), %s442_s21, 128 }
  0x13   : > { %p670_p12 = scmp.ne.s32.totalorder (!%p202_p10), %s442_s21, %s669_s29 }
  0x14   : > { %v747_v0 = vmov 0.0   ;;  %vm748_vm0 = vmmov 0   ;;  %s250_s26 = scalar_select %p249_p11, %s737_s15, 1  ;;  %vm283_vm1 = vcmask 7168   ;;  %v749_v3 = vmov -inf  }
  0x15   : > { %589 = vmatprep.subr.bf16.mxu0 %v747_v0  ;;  %591 = vmatprep.mubr.msk.bf16.mxu0 %vm748_vm0, %v747_v0  ;;  %284 = vst.msk [vmem:[#allocation2] sm:$0xff] %vm283_vm1, %v749_v3  ;;  %285 = vst.msk [vmem:[#allocation3] sm:$0xff] %vm283_vm1, %v747_v0  ;;  %vm331_vm2 = vcmask 64512   ;;  %v750_v9 = vmov 0   ;;  %vm366_vm3 = vcmask 1043456   ;;  %p671_p13 = pnand %p670_p12, %p812_p4 }
  0x16   : > { %595 = vmatprep.subr.bf16.mxu1 %v747_v0  ;;  %597 = vmatprep.mubr.msk.bf16.mxu1 %vm748_vm0, %v747_v0  ;;  %s829_s27 = smul.u32 12, %s250_s26 }
  0x17   : > { %661 = vset.pattern.permute.xlu0 %v750_v9  ;;  %662 = vset.pattern.permute.xlu1 %v750_v9  ;;  %p672_p0 = pneg %p671_p13 }
  0x18   : > { %s508_s30 = scalar_lea.vmem %s890_s1, %s829_s27  ;;  %s257_s6 = scalar_lea.vmem %s889_s0, %s829_s27 }
  0x19   : > { %v578_v1 = vld [vmem:[%s508_s30 + $0x4] sm:$0xf]  ;;  %v287_v2 = vld [vmem:[%s257_s6] sm:$0xf]  ;;  %s514_s9 = scalar_lea.vmem %s891_s2, %s829_s27  ;;  %s439_s27 = scalar_lea.hbm %s892_s3, %s582_s18 }
  0x1a   : > { %590 = vmatpush3.bf16.xpose.msra.mxu0 %v578_v1  ;;  %v579_v14 = vld [vmem:[%s514_s9 + $0x8] sm:$0xf]  ;;  %s751_s30 = smov [#allocation5]  }
  0x1b   : > { %v368_v15 = vsel %vm366_vm3, %v579_v14, 0  ;;  %s673_s4 = sshll.u32 %s751_s30, 4  ;;  %s674_s4 = int_to_ptr.vmem [resolvable:$false] %s673_s4 }
  0x1c   : > { %v330_v10 = vld [vmem:[#allocation2] sm:$0xff]  ;;  %596 = vmatpush3.bf16.msra.mxu1 %v368_v15  ;;  %v347_v24 = vld [vmem:[#allocation3] sm:$0xff]  ;;  %s675_s15 = scalar_lea.vmem %s674_s4, 256  ;;  %p676_p1 = scmp.lt.s32.totalorder %s442_s21, %s674_s4 }
  0x1d   : > { %p677_p2 = scmp.lt.s32.totalorder %s675_s15, %s669_s29 }
  0x1f   : > { %p678_p3 = por %p677_p2, %p676_p1 }
  0x21   : > { %592 = vmatmul.mubr.bf16.vlgmr.msra.gmra.mxu0 %v287_v2  ;;  %p679_p5 = pnand %p678_p3, %p672_p0 }
  0xe1   : > { %v324_v4 = vpop.f32.mrf.mxu0 }
  0xe2   : > { %v332_v5 = vsel %vm331_vm2, %v324_v4, -inf }
  0xe3   : > { %333 = vmax.xlane.f32.xlu0 %v332_v5  ;;  %v593_v6 = vpop.f32.mrf.mxu0 }
  0xe5   : > { %v327_v7 = vpop.f32.mrf.mxu0 }
  0xe7   : > { %v594_v8 = vpop.f32.mrf.mxu0 }
 0x16c   : > { %v334_v11 = vpop.xlane.xlu0 %333 }
 0x16d   : > { %v335_v12 = vmax.f32 %v330_v10, %v334_v11 }
 0x16f   : > { %v336_v13 = vsub.f32 %v330_v10, %v335_v12  ;;  %412 = vst.msk [vmem:[#allocation2] sm:$0xff] %vm283_vm1, %v335_v12  ;;  %341 = vperm.xlu0 %661, %v335_v12  }
 0x171   : > { %v337_v20 = vmul.f32 1.442695, %v336_v13 }
 0x1ea   : > { %v342_v16 = vpop.permute.xlu0 %341 }
 0x1eb   : > { %v344_v17 = vsub.f32 %v324_v4, %v342_v16 }
 0x1ed   : > { %v345_v18 = vmul.f32 1.442695, %v344_v17 }
 0x1ef   : > { %663 = vpow2.f32 %v345_v18 }
 0x1f0   : > { %665 = vpow2.f32 %v337_v20 }
 0x1fc   : > { %v664_v19 = vpop.eup %663 }
 0x1fd   : > { %v349_v21 = vsel %vm331_vm2, %v664_v19, 0.0  ;;  %v362_v22 = vpack.c.bf16 %v664_v19, %v664_v19  ;;  %v666_v23 = vpop.eup %665 }
 0x1fe   : > { %350 = vadd.xlane.f32.xlu1 %v349_v21  ;;  %v348_v25 = vmul.f32 %v666_v23, %v347_v24 }
 0x1ff   : > { %598 = vmatmul.mubr.msk.bf16.vlgmr.msra.gmra.mxu1 %vm331_vm2, %v362_v22 }
 0x20f   : > { %358 = vperm.xlu1 %662, %v666_v23  }
 0x287   : > { %v351_v26 = vpop.xlane.xlu1 %350 }
 0x288   : > { %v352_v27 = vadd.f32 %v351_v26, %v348_v25 }
 0x28a   : > { %354 = vst.msk [vmem:[#allocation3] sm:$0xff] %vm283_vm1, %v352_v27 }
 0x28b   : > { %v359_v34 = vpop.permute.xlu1 %358 }
 0x28c   : > { %v361_v35 = vmul.f32 0.0, %v359_v34 }
 0x291   : > { %v416_v28 = vld [vmem:[#allocation3] sm:$0xff] }
 0x292   : > { %667 = vrcp.f32 %v416_v28 }
 0x29f   : > { %v668_v29 = vpop.eup %667 }
 0x2a0   : > { %421 = vperm.xlu1 %662, %v668_v29  }
 0x2bf   : > { %v404_v30 = vpop.f32.mrf.mxu1 }
 0x2c0   : > { %v410_v36 = vadd.f32 %v404_v30, %v361_v35 }
 0x2c1   : > { %v599_v31 = vpop.f32.mrf.mxu1 }
 0x2c3   : > { %v407_v32 = vpop.f32.mrf.mxu1 }
 0x2c5   : > { %v600_v33 = vpop.f32.mrf.mxu1 }
 0x31b   : > { %v422_v37 = vpop.permute.xlu1 %421 }
 0x31c   : > { %v424_v38 = vmul.f32 %v422_v37, %v410_v36 }
 0x31e   : > { %425 = vst [vmem:[%s248_s19] sm:$0xff] %v424_v38 }
 0x31f   : > { %682 = shalt.err (!%p679_p5)
}
 0x320   : > { %s683_s5 = scalar_lea.hbm %s439_s27, 128  ;;  %s687_s8 = scalar_lea.hbm %s892_s3, 256 }
 0x321   : > { %p684_p6 = scmp.ne.s32.totalorder %s439_s27, %s683_s5  ;;  %p688_p10 = scmp.lt.s32.totalorder %s439_s27, %s892_s3 }
 0x322   : > { %p689_p11 = scmp.lt.s32.totalorder %s687_s8, %s683_s5 }
 0x323   : > { %p685_p7 = pnand %p684_p6, %p812_p4 }
 0x324   : > { %p690_p12 = por %p689_p11, %p688_p10 }
 0x325   : > { %p686_p9 = pneg %p685_p7 }
 0x327   : > { %p691_p13 = pnand %p690_p12, %p686_p9 }
 0x329   : > { %694 = shalt.err (!%p691_p13)
}
 0x32a   : > { %602 = dma.vmem_to_hbm [thread:$0]  (%p812_p4), %s442_s21, 128, %s439_s27, %s427_s28  }
 0x32b PF: > { %p608_p0 = scmp.ge.s32.totalorder %s745_s17, 2  ;;  %s453_s11 = sand.u32 1, %s725_s12  }
 0x32c   : > { %s454_s18 = scalar_lea.sflag [#allocation6], %s453_s11 }
 0x32d   : > { %p605_p1 = pnand %p608_p0, %p819_p8 }
 0x32f   : > { %p606_p2 = pneg %p605_p1 }
 0x331   : > { %720 = dma.done.wait (%p606_p2), %s454_s18, 128  }
 0x332   : > { %722 = vsyncadd (%p606_p2), %s454_s18, 4294967168  ;;  %s16_s17 = sadd.s32 1, %s745_s17   ;;  %s895_s12 = smov %s729_s13 }
 0x333   : > { %p13_p3 = scmp.ge.s32.totalorder %s16_s17, 4   ;;  %s896_s13 = smov %s733_s14 }
 0x334   : > { %s897_s14 = smov %s825_s25  ;;  %s898_s15 = smov %s741_s16 }
 0x335   : > { %s899_s16 = smov %s901_s20  ;;  %15 = sbr.rel (!%p13_p3) target bundleno = 4 (0x4), region = 81 }
 0x33a   :  { %459 = vsyncpa [#allocation6], 1 }
 0x33b   :  { %461 = vsyncpa [#allocation6 + $0x1], 1 }

</bundles_post_ra>
